<compile_context>
chip_gen: v5e
topology: v5e:2x2
jax: 0.10.0
libtpu: 0.0.40
codegen_flags: <defaults>
</compile_context>

<pallas_src>
import jax
import jax.numpy as jnp
from jax import lax
from jax.experimental import pallas as pl
from jax.experimental.pallas import tpu as pltpu


_MAX_UNROLL = 32          # static-unroll threshold for the per-crop copy loop
_VMEM_BUDGET = 12 << 20   # stay under the smallest default scoped VMEM (v5e: 16 MiB)


def _round_up(x, m):
    return -(-x // m) * m


def _choose_group(nx, cs, c, width, itemsize):
    """Pick crops-per-step G and the input block width bw (static Python ints)."""

    def vmem_bytes(g, bw):
        sub = _round_up(cs, max(8, 32 // itemsize))      # sublane padding
        in_b = c * sub * _round_up(bw, 128) * itemsize
        out_b = g * c * sub * _round_up(cs, 128) * itemsize
        return 2 * (in_b + out_b)                        # double-buffered in + out

    # Preferred: a whole crop-row per grid step (input block spans full W, so
    # the (8,128) rule is satisfied for any W).
    if vmem_bytes(nx, width) <= _VMEM_BUDGET:
        return nx, width
    # Otherwise: largest divisor of nx whose partial block width is a
    # multiple of 128 lanes and fits the VMEM budget.
    for g in range(nx - 1, 0, -1):
        if nx % g or (g * cs) % 128:
            continue
        if vmem_bytes(g, g * cs) <= _VMEM_BUDGET:
            return g, g * cs
    # Fallback: correctness first — take the full row even if it is large.
    return nx, width


def _make_grid_crop_kernel(num_crops, cs):
    """Kernel copying `num_crops` crops out of a (C, cs, bw) strip.

    img_ref : (C, cs, bw) VMEM strip for this (crop-row, group) grid step
    out_ref : (num_crops, C, cs, cs) VMEM output block
    """
    if num_crops <= _MAX_UNROLL:
        def kernel(img_ref, out_ref):
            for ix in range(num_crops):          # static offsets, fully unrolled
                out_ref[ix] = img_ref[:, :, ix * cs:(ix + 1) * cs]
    else:
        def kernel(img_ref, out_ref):
            def body(ix, carry):
                col = pl.multiple_of(ix * cs, cs)
                out_ref[ix] = img_ref[:, :, pl.ds(col, cs)]
                return carry
            lax.fori_loop(0, num_crops, body, 0)
    return kernel


def grid_crop(img, crop_size, return_positions=False):
    """Pallas implementation of GridCrop.forward.

    img: (C, H, W) array.
    Returns crops (N, C, crop_size, crop_size); optionally also positions
    (N, 2) holding (x, y) top-left pixel coordinates of each crop.

    Note: for sub-32-bit dtypes (bf16/int8) crop_size should be a multiple of
    the sublane packing (16 / 32) to avoid padded tiles / partial stores.
    """
    c, height, width = img.shape
    cs = crop_size
    ny = height // cs
    nx = width // cs
    total = ny * nx

    group, block_w = _choose_group(nx, cs, c, width, jnp.dtype(img.dtype).itemsize)
    nxg = nx // group
    kernel = _make_grid_crop_kernel(group, cs)

    crops = pl.pallas_call(
        kernel,
        out_shape=jax.ShapeDtypeStruct((total, c, cs, cs), img.dtype),
        grid_spec=pltpu.PrefetchScalarGridSpec(
            num_scalar_prefetch=0,
            grid=(ny, nxg),
            in_specs=[
                # Strip of `cs` image rows covering `group` crops.  When
                # group == nx the block spans the full width W (legal for any
                # W); otherwise its width group*cs is a multiple of 128.
                pl.BlockSpec((c, cs, block_w), lambda iy, g: (0, iy, g)),
            ],
            out_specs=pl.BlockSpec(
                (group, c, cs, cs),
                lambda iy, g: (iy * nxg + g, 0, 0, 0),
            ),
        ),
        compiler_params=pltpu.CompilerParams(
            # Every (iy, g) step is independent -> both axes parallel
            # (lets v7x shard the grid across its two TensorCores).
            dimension_semantics=("parallel", "parallel")
        ),
    )(img)

    if return_positions:
        # Positions are pure index arithmetic (glue), computed in plain JAX.
        x_idx = jnp.arange(nx, dtype=jnp.int32) * cs
        y_idx = jnp.arange(ny, dtype=jnp.int32) * cs
        y_grid, x_grid = jnp.meshgrid(y_idx, x_idx, indexing="ij")
        positions = jnp.stack([x_grid.reshape(-1), y_grid.reshape(-1)], axis=1)
        return crops, positions
    return crops


def _grid_crop_ref(img, crop_size):
    """Pure-JAX reference matching torch unfold/permute/reshape semantics."""
    c, h, w = img.shape
    cs = crop_size
    ny, nx = h // cs, w // cs
    x = img[:, : ny * cs, : nx * cs]
    x = x.reshape(c, ny, cs, nx, cs)
    x = jnp.transpose(x, (1, 3, 0, 2, 4))  # (ny, nx, c, cs, cs)
    return x.reshape(ny * nx, c, cs, cs)


if __name__ == "__main__":
    k1, k2, k3 = jax.random.split(jax.random.PRNGKey(0), 3)

    # Case 1: small image, positions requested (matches module defaults).
    img1 = jax.random.normal(k1, (4, 16, 16), dtype=jnp.float32)
    crops1, pos1 = grid_crop(img1, 8, return_positions=True)
    crops1 = jax.block_until_ready(crops1)
    pos1 = jax.block_until_ready(pos1)
    ref1 = _grid_crop_ref(img1, 8)
    assert crops1.shape == ref1.shape, (crops1.shape, ref1.shape)
    assert jnp.allclose(crops1, ref1), "crop values mismatch (case 1)"
    ny, nx = 16 // 8, 16 // 8
    iy, ix = jnp.divmod(jnp.arange(ny * nx), nx)
    ref_pos = jnp.stack([ix * 8, iy * 8], axis=1)
    assert jnp.array_equal(pos1, ref_pos), "positions mismatch"

    # Case 2: wide image -> many crops per grid step, exercises the
    # fori_loop (dynamic column offset) branch of the kernel.
    img2 = jax.random.normal(k2, (3, 16, 512), dtype=jnp.float32)
    crops2 = jax.block_until_ready(grid_crop(img2, 8))
    assert jnp.allclose(crops2, _grid_crop_ref(img2, 8)), "crop mismatch (case 2)"

    # Case 3: H and W not multiples of crop_size -> remainder dropped,
    # matching torch.unfold.
    img3 = jax.random.normal(k3, (2, 20, 18), dtype=jnp.float32)
    crops3 = jax.block_until_ready(grid_crop(img3, 8))
    assert jnp.allclose(crops3, _grid_crop_ref(img3, 8)), "crop mismatch (case 3)"

    print("KERNEL_OK")
</pallas_src>

<mosaic_0001>
module attributes {stable_mosaic.version = 11 : i64} {
  func.func @kernel(%arg0: i32, %arg1: i32, %arg2: memref<4x8x16xf32, #tpu.memory_space<vmem>>, %arg3: memref<2x4x8x8xf32, #tpu.memory_space<vmem>>) attributes {dimension_semantics = [#tpu.dimension_semantics<parallel>, #tpu.dimension_semantics<parallel>], iteration_bounds = array<i64: 2, 1>, scalar_prefetch = 0 : i64, scratch_operands = 0 : i64, tpu.core_type = #tpu.core_type<tc>, window_params = [{transform_indices = @transform_0, window_bounds = array<i64: 4, 8, 16>}, {transform_indices = @transform_1, window_bounds = array<i64: 2, 4, 8, 8>}]} {
    %c0 = arith.constant 0 : index
    %c0_0 = arith.constant 0 : index
    %c0_1 = arith.constant 0 : index
    %0 = vector.load %arg2[%c0, %c0_0, %c0_1] : memref<4x8x16xf32, #tpu.memory_space<vmem>>, vector<4x8x8xf32>
    %c0_2 = arith.constant 0 : index
    %c0_3 = arith.constant 0 : index
    %c0_4 = arith.constant 0 : index
    %c0_5 = arith.constant 0 : index
    %1 = vector.load %arg3[%c0_2, %c0_3, %c0_4, %c0_5] : memref<2x4x8x8xf32, #tpu.memory_space<vmem>>, vector<1x4x8x8xf32>
    %2 = vector.shape_cast %1 : vector<1x4x8x8xf32> to vector<4x8x8xf32>
    %3 = vector.shape_cast %0 : vector<4x8x8xf32> to vector<1x4x8x8xf32>
    tpu.vector_store %arg3[%c0_2, %c0_3, %c0_4, %c0_5], %3 {strides = array<i32>} : memref<2x4x8x8xf32, #tpu.memory_space<vmem>>, vector<1x4x8x8xf32>,
    %c0_6 = arith.constant 0 : index
    %c0_7 = arith.constant 0 : index
    %c8 = arith.constant 8 : index
    %4 = vector.load %arg2[%c0_6, %c0_7, %c8] : memref<4x8x16xf32, #tpu.memory_space<vmem>>, vector<4x8x8xf32>
    %c1 = arith.constant 1 : index
    %c0_8 = arith.constant 0 : index
    %c0_9 = arith.constant 0 : index
    %c0_10 = arith.constant 0 : index
    %5 = vector.load %arg3[%c1, %c0_8, %c0_9, %c0_10] : memref<2x4x8x8xf32, #tpu.memory_space<vmem>>, vector<1x4x8x8xf32>
    %6 = vector.shape_cast %5 : vector<1x4x8x8xf32> to vector<4x8x8xf32>
    %7 = vector.shape_cast %4 : vector<4x8x8xf32> to vector<1x4x8x8xf32>
    tpu.vector_store %arg3[%c1, %c0_8, %c0_9, %c0_10], %7 {strides = array<i32>} : memref<2x4x8x8xf32, #tpu.memory_space<vmem>>, vector<1x4x8x8xf32>,
    return
  }
  func.func @transform_0(%arg0: i32, %arg1: i32) -> (i32, i32, i32) {
    %c0_i32 = arith.constant 0 : i32
    %c0_i32_0 = arith.constant 0 : i32
    return %c0_i32, %arg0, %arg1 : i32, i32, i32
  }
  func.func @transform_1(%arg0: i32, %arg1: i32) -> (i32, i32, i32, i32) {
    %c1_i32 = arith.constant 1 : i32
    %0 = arith.muli %arg0, %c1_i32 : i32
    %1 = arith.addi %0, %arg1 : i32
    %c0_i32 = arith.constant 0 : i32
    %c0_i32_0 = arith.constant 0 : i32
    %c0_i32_1 = arith.constant 0 : i32
    %c0_i32_2 = arith.constant 0 : i32
    return %1, %c0_i32, %c0_i32_0, %c0_i32_1 : i32, i32, i32, i32
  }
}

</mosaic_0001>

<bundles_post_ra>
// kernel: tpu_custom_call.1
= control target key start
LH: loop header
LB: loop body
LE: loop exit
PB: predicated region body
PF: predicated region fallthrough
CT: control target
= control target key end

     0   :  { %6 = vsyncpa [#allocation3], 0  ;;  %s638_s0 = inlined_call_operand.hbm [shape: f32[4,16,16], index: 0, kind: input, shape index: {}]   ;;  %s639_s1 = inlined_call_operand.hbm [shape: f32[4,4,8,8], index: 1, kind: output, shape index: {}]  }
   0x1   :  { %8 = vsyncpa [#allocation3 + $0x1], 0 }
   0x2   :  { %9 = vsyncpa [#allocation4], 0 }
   0x3   :  { %11 = vsyncpa [#allocation4 + $0x1], 0  ;;  %s509_s6 = smov 0   ;;  %s511_s7 = smov 0  }
   0x4   :  { %s513_s8 = smov 0   ;;  %s515_s9 = smov 0  }
   0x5   :  { %s517_s10 = smov 0   ;;  %s519_s11 = smov 0  }
   0x6 LB: > { %s290_s12 = sadd.s32 4294967295, %s491_s11   ;;  %s291_s13 = sadd.s32 4294967294, %s491_s11   ;;  %s491_s11 = sphi %s519_s11, %s17_s11   ;;  %s487_s10 = sphi %s517_s10, %s648_s10   ;;  %s483_s9 = sphi %s515_s9, %s647_s9   ;;  %s479_s8 = sphi %s513_s8, %s646_s8   ;;  %s475_s7 = sphi %s511_s7, %s645_s7   ;;  %s471_s6 = sphi %s509_s6, %s644_s6  }
   0x7   : > { %s29_s14 = sadd.s32 1, %s487_s10  ;;  %s38_s15 = sadd.s32 1, %s479_s8 }
   0x8   : > { %p31_p0 = scmp.ge.s32.totalorder %s29_s14, 2  ;;  %p45_p1 = scmp.ne.s32.totalorder %s479_s8, %s475_s7 }
   0x9   : > { %p46_p2 = scmp.eq.s32.totalorder %s491_s11, 0  ;;  %p51_p3 = scmp.ne.s32.totalorder %s475_s7, %s471_s6 }
   0xa   : > { %s650_s14 = smov (%p31_p0, %s29_s14), 0  ;;  %p52_p5 = scmp.eq.s32.totalorder %s290_s12, 0 }
   0xb   : > { %p550_p4 = por %p46_p2, %p45_p1  ;;  %s33_s17 = ssub.s32 %s487_s10, %s650_s14 }
   0xc   : > { %p77_p6 = scmp.eq.s32.totalorder %s290_s12, 1  ;;  %p36_p7 = scmp.eq.s32.totalorder %s33_s17, 0 }
   0xd   : > { %p556_p8 = por %p52_p5, %p51_p3  ;;  %p83_p10 = scmp.eq.s32.totalorder %s291_s13, 1 }
   0xe   : > { %p560_p9 = por %p77_p6, %p45_p1  ;;  %p293_p12 = scmp.ge.s32.totalorder %s491_s11, 2 }
   0xf   : > { %s565_s20 = scalar_select %p36_p7, %s479_s8, %s38_s15  }
  0x10   : > { %p567_p11 = por %p83_p10, %p51_p3  ;;  %p323_p13 = scmp.lt.s32.totalorder %s491_s11, 2 }
  0x11   : > { %s103_s22 = sand.u32 1, %s479_s8   ;;  %s295_s24 = sshll.u32 %s487_s10, 3 }
  0x12   : > { %s294_s23 = sshll.u32 %s103_s22, 5  ;;  %s112_s27 = scalar_lea.hbm %s638_s0, %s295_s24 }
  0x13   : > { %s107_s28 = scalar_lea.vmem [#allocation2], %s294_s23  ;;  %s113_s30 = sshll.u32 %s112_s27, 4  ;;  %s114_s30 = int_to_ptr.hbm [resolvable:$true] %s113_s30 }
  0x14   : > { %s115_s29 = sshll.u32 %s107_s28, 4  ;;  %p316_p0 = pnand %p323_p13, %p550_p4  ;;  %s116_s29 = int_to_ptr.vmem [resolvable:$true] %s115_s29 }
  0x15   : > { %s104_s2 = scalar_lea.sflag [#allocation3], %s103_s22  ;;  %s493_s3 = smov 256  }
  0x16   : > { %s494_s4 = smov 128   ;;  %s495_s5 = smov 8  }
  0x17   : > { %318 = dma.hbm_to_vmem [thread:$0]  (!%p316_p0), %s114_s30, 512, %s116_s29, %s104_s2, %s493_s3, %s494_s4, %s495_s5  }
  0x18   : > { %p296_p1 = scmp.ge.s32.totalorder %s491_s11, 1  ;;  %p123_p2 = scmp.lt.s32.totalorder %s491_s11, 3 }
  0x1a   : > { %p124_p3 = pnand %p296_p1, %p123_p2 }
  0x1b   : > { %s583_s12 = sand.u32 (!%p124_p3), 1, %s475_s7  }
  0x1c   : > { %127 = sbr.rel (%p124_p3) target bundleno = 163 (0xa3), region = 24  ;;  %s297_s13 = sshll.u32 (!%p124_p3), %s583_s12, 5 }
  0x1d   : > { %s130_s15 = scalar_lea.sflag (!%p124_p3), [#allocation3], %s583_s12  ;;  %s133_s17 = scalar_lea.vmem (!%p124_p3), [#allocation2], %s297_s13 }
  0x21   : > { %462 = dma.done.wait (%p556_p8), %s130_s15, 512  }
  0x22   : > { %464 = vsyncadd (%p556_p8), %s130_s15, 4294966784  ;;  %s298_s16 = sshll.u32 %s583_s12, 6  ;;  %v166_v0 = vld [vmem:[%s133_s17 + $0x10] sm:$0xff]  ;;  %v164_v1 = vld [vmem:[%s133_s17] sm:$0xff]  ;;  %vm159_vm0 = vcmask 64512   ;;  %s496_s22 = smov 120  }
  0x23   : > { %176 = vrot.lane.b32.xlu1 %v166_v0, %s496_s22  ;;  %172 = vrot.lane.b32.xlu0 %v164_v1, %s496_s22  ;;  %v165_v2 = vld [vmem:[%s133_s17 + $0x8] sm:$0xff]  ;;  %s152_s23 = scalar_lea.vmem [#allocation5], %s298_s16  ;;  %v167_v3 = vld [vmem:[%s133_s17 + $0x18] sm:$0xff]  ;;  %s310_s18 = sshll.u32 %s483_s9, 6 }
  0x24   : > { %160 = vst.msk [vmem:[%s152_s23] sm:$0xff] %vm159_vm0, %v164_v1  ;;  %s203_s26 = scalar_lea.hbm %s639_s1, %s310_s18  ;;  %s204_s27 = sshll.u32 %s152_s23, 4  ;;  %s205_s27 = int_to_ptr.vmem [resolvable:$true] %s204_s27 }
  0x25   : > { %161 = vst.msk [vmem:[%s152_s23 + $0x8] sm:$0xff] %vm159_vm0, %v165_v2  ;;  %s206_s28 = sshll.u32 %s203_s26, 4  ;;  %s190_s9 = scalar_lea.sflag [#allocation4], %s583_s12  ;;  %s207_s28 = int_to_ptr.hbm [resolvable:$true] %s206_s28 }
  0x26   : > { %162 = vst.msk [vmem:[%s152_s23 + $0x10] sm:$0xff] %vm159_vm0, %v166_v0  ;;  %s423_s29 = sshra.s32 %s207_s28, 4  ;;  %s429_s4 = scalar_lea.hbm %s639_s1, 128  ;;  %s424_s29 = int_to_ptr.hbm [resolvable:$true] %s423_s29 }
  0x27   : > { %163 = vst.msk [vmem:[%s152_s23 + $0x18] sm:$0xff] %vm159_vm0, %v167_v3  ;;  %s425_s30 = scalar_lea.hbm %s424_s29, 64  ;;  %p430_p7 = scmp.lt.s32.totalorder %s424_s29, %s639_s1 }
  0x28   : > { %p426_p4 = scmp.ne.s32.totalorder %s424_s29, %s425_s30  ;;  %p431_p8 = scmp.lt.s32.totalorder %s429_s4, %s425_s30 }
  0x2a   : > { %p427_p5 = pnand %p426_p4, %p560_p9  ;;  %p432_p10 = por %p431_p8, %p430_p7 }
  0x2b   : > { %178 = vrot.lane.b32.xlu1 %v167_v3, %s496_s22  ;;  %174 = vrot.lane.b32.xlu0 %v165_v2, %s496_s22 }
  0x2c   : > { %p428_p6 = pneg %p427_p5 }
  0x2e   : > { %p433_p13 = pnand %p432_p10, %p428_p6 }
  0x95   : > { %v177_v4 = vpop.permute.xlu1 %176  ;;  %v173_v5 = vpop.permute.xlu0 %172 }
  0x96   : > { %301 = vst.msk [vmem:[%s152_s23 + $0x30] sm:$0xff] %vm159_vm0, %v177_v4 }
  0x97   : > { %299 = vst.msk [vmem:[%s152_s23 + $0x20] sm:$0xff] %vm159_vm0, %v173_v5 }
  0x9d   : > { %v179_v6 = vpop.permute.xlu1 %178  ;;  %v175_v7 = vpop.permute.xlu0 %174 }
  0x9e   : > { %302 = vst.msk [vmem:[%s152_s23 + $0x38] sm:$0xff] %vm159_vm0, %v179_v6 }
  0x9f   : > { %300 = vst.msk [vmem:[%s152_s23 + $0x28] sm:$0xff] %vm159_vm0, %v175_v7 }
  0xa0   : > { %436 = shalt.err (!%p433_p13)
}
  0xa1   : > { %s497_s12 = smov 128   ;;  %s498_s15 = smov 8  }
  0xa2   : > { %313 = dma.vmem_to_hbm [thread:$0]  (%p560_p9), %s205_s27, 1024, %s207_s28, %s190_s9, %s497_s12, %s497_s12, %s498_s15  }
  0xa3 PF: > { %s221_s17 = sand.u32 1, %s471_s6   ;;  %p320_p0 = pnand %p293_p12, %p567_p11 }
  0xa4   : > { %s222_s16 = scalar_lea.sflag [#allocation4], %s221_s17 }
  0xa5   : > { %p321_p1 = pneg %p320_p0 }
  0xa7   : > { %466 = dma.done.wait (%p321_p1), %s222_s16, 1024  }
  0xa8   : > { %468 = vsyncadd (%p321_p1), %s222_s16, 4294966272  ;;  %s17_s11 = sadd.s32 1, %s491_s11   ;;  %s644_s6 = smov %s475_s7 }
  0xa9   : > { %p14_p2 = scmp.ge.s32.totalorder %s17_s11, 4   ;;  %s645_s7 = smov %s479_s8 }
  0xaa   : > { %s646_s8 = smov %s565_s20  ;;  %s647_s9 = smov %s487_s10 }
  0xab   : > { %s648_s10 = smov %s650_s14  ;;  %16 = sbr.rel (!%p14_p2) target bundleno = 6 (0x6), region = 70 }
  0xb0   :  { %228 = vsyncpa [#allocation3], 1 }
  0xb1   :  { %230 = vsyncpa [#allocation3 + $0x1], 1 }
  0xb2   :  { %231 = vsyncpa [#allocation4], 1 }
  0xb3   :  { %233 = vsyncpa [#allocation4 + $0x1], 1 }

</bundles_post_ra>
